<compile_context>
chip_gen: v5e
topology: v5e:2x2
jax: 0.10.0
libtpu: 0.0.40
codegen_flags: <defaults>
</compile_context>

<pallas_src>
import functools

import jax
import jax.numpy as jnp
from jax import lax
from jax.experimental import pallas as pl
from jax.experimental.pallas import tpu as pltpu


def _round_up(n: int, m: int) -> int:
    return ((n + m - 1) // m) * m


def _vmem_capacity_bytes() -> int:
    """Physical VMEM per TensorCore; falls back to the v7x worst case."""
    try:
        info = pltpu.get_tpu_info()
        cap = getattr(info, "vmem_capacity_bytes", None)
        if cap:
            return int(cap)
    except Exception:
        pass
    return 64 * 1024 * 1024  # v7x (smallest of v5e/v6e/v7x)


def _mlp_kernel(x_ref, w1_ref, b1_ref, w2_ref, b2_ref, w3t_ref, b3_ref, o_ref,
                *, sub: int):
    compute_dtype = w1_ref.dtype          # bf16 by default (f32 if use_bf16=False)
    block = x_ref.shape[0]
    H1 = w1_ref.shape[1]
    H2 = w2_ref.shape[1]
    n_sub = block // sub                   # static

    # Resident weights / biases (hoisted out of the sub-chunk loop; broadcasts
    # are hoisted too since JAX does not CSE broadcast_in_dim).
    w1 = w1_ref[...]
    w2 = w2_ref[...]
    w3t = w3t_ref[...]
    b1 = jnp.broadcast_to(b1_ref[...], (sub, H1))
    b2 = jnp.broadcast_to(b2_ref[...], (sub, H2))
    b3 = b3_ref[...]

    # Independent row sub-chunks (statically unrolled) give the scheduler
    # material to overlap MXU pushes of chunk j+1 with the VPU epilogue of j.
    for j in range(n_sub):
        r0 = j * sub                       # static slice offsets -> zero cost
        x = x_ref[r0:r0 + sub, :].astype(compute_dtype)

        # fc1 + ReLU: MXU matmul, f32 accumulate; bias + ReLU in f32 on the VPU.
        h1 = jnp.dot(x, w1, preferred_element_type=jnp.float32)
        h1 = jnp.maximum(h1 + b1, 0.0)

        # fc2 + ReLU.
        h2 = jnp.dot(h1.astype(compute_dtype), w2,
                     preferred_element_type=jnp.float32)
        h2 = jnp.maximum(h2 + b2, 0.0)

        # fc3, transposed: (1, 64) x (sub, 64)^T -> (1, sub).
        # Keeps the output store lane-dense instead of a 1-of-128 masked store.
        out_row = lax.dot_general(
            w3t, h2.astype(compute_dtype),
            dimension_numbers=(((1,), (1,)), ((), ())),
            preferred_element_type=jnp.float32,
        ) + b3
        o_ref[:, r0:r0 + sub] = out_row.astype(o_ref.dtype)


@functools.partial(jax.jit, static_argnames=("block_b", "use_bf16"))
def content_based_model_forward(x, w1, b1, w2, b2, w3, b3, *,
                                block_b=1024, use_bf16=True):
    """Forward pass of ContentBasedModel as a fused Pallas kernel.

    x: (B, D). w1: (D, 128), w2: (128, 64), w3: (64, 1); biases (1, out) or (out,).
    Returns (B, 1) float32.
    """
    B, D = x.shape
    H1 = w1.shape[1]
    H2 = w2.shape[1]

    compute_dtype = jnp.bfloat16 if use_bf16 else jnp.float32

    # Weights are tiny and held resident in VMEM; cast them once here.
    w1c = w1.astype(compute_dtype)
    w2c = w2.astype(compute_dtype)
    w3t = w3.reshape(1, H2).astype(compute_dtype)       # (1, 64) row for transposed fc3
    b1c = b1.reshape(1, H1).astype(jnp.float32)
    b2c = b2.reshape(1, H2).astype(jnp.float32)
    b3c = b3.reshape(1, 1).astype(jnp.float32)

    # ---- batch-tile selection: 128-aligned, megacore- and VMEM-aware --------
    blk = max(128, _round_up(block_b, 128))
    # Give the "parallel" grid axis ~4+ steps when B allows, so both v7x
    # TensorCores get work (no cost on single-TC v5e/v6e).
    blk = min(blk, max(128, _round_up(pl.cdiv(B, 4), 128)))
    blk = min(blk, _round_up(B, 128))

    x_itemsize = jnp.dtype(x.dtype).itemsize
    wgt_bytes = 2 * ((D * H1 + H1 * H2 + H2) * jnp.dtype(compute_dtype).itemsize
                     + (H1 + H2 + 1) * 4)               # weights+biases, 2 bufs

    def _vmem_estimate(b):
        return (2 * b * D * x_itemsize      # double-buffered x tile
                + 2 * b * 4                 # double-buffered (1, b) f32 out row
                + wgt_bytes
                + 4 * 1024 * 1024)          # slack: in-kernel casts/activations

    budget = (3 * _vmem_capacity_bytes()) // 4   # ~48 MiB v7x, ~96 MiB v5e/v6e
    while blk > 128 and _vmem_estimate(blk) > budget:
        blk -= 128
    vmem_limit = int(min(budget, max(32 * 1024 * 1024, _vmem_estimate(blk))))

    sub = 256 if blk % 256 == 0 else 128         # rows per in-kernel sub-chunk

    # x is NOT padded: the partial last block reads garbage rows whose results
    # only land in output lanes >= B (sliced off below). Only the output is
    # allocated padded so every store is a full-lane vst.
    n_blocks = pl.cdiv(B, blk)
    out_lanes = n_blocks * blk

    out_row = pl.pallas_call(
        functools.partial(_mlp_kernel, sub=sub),
        out_shape=jax.ShapeDtypeStruct((1, out_lanes), jnp.float32),
        grid_spec=pltpu.PrefetchScalarGridSpec(
            num_scalar_prefetch=0,
            grid=(n_blocks,),
            in_specs=[
                pl.BlockSpec((blk, D), lambda i: (i, 0)),   # x: streamed over batch
                pl.BlockSpec((D, H1), lambda i: (0, 0)),    # w1 (resident)
                pl.BlockSpec((1, H1), lambda i: (0, 0)),    # b1
                pl.BlockSpec((H1, H2), lambda i: (0, 0)),   # w2
                pl.BlockSpec((1, H2), lambda i: (0, 0)),    # b2
                pl.BlockSpec((1, H2), lambda i: (0, 0)),    # w3^T
                pl.BlockSpec((1, 1), lambda i: (0, 0)),     # b3
            ],
            # Lane-dense output: grid step i fills lanes [i*blk, (i+1)*blk) of a
            # single (1, out_lanes) row.
            out_specs=pl.BlockSpec((1, blk), lambda i: (0, i)),
        ),
        compiler_params=pltpu.CompilerParams(
            dimension_semantics=("parallel",),
            vmem_limit_bytes=vmem_limit,
        ),
    )(x, w1c, b1c, w2c, b2c, w3t, b3c)

    # (1, out_lanes) lane-major row -> (B, 1) column, matching PyTorch's output.
    return out_row[:, :B].reshape(B, 1)


def init_params(key, input_dim):
    """Deterministic init mimicking PyTorch nn.Linear default U(-1/sqrt(fan_in), +)."""
    dims = [(input_dim, 128), (128, 64), (64, 1)]
    params = []
    for fan_in, fan_out in dims:
        key, kw, kb = jax.random.split(key, 3)
        bound = 1.0 / jnp.sqrt(jnp.float32(fan_in))
        w = jax.random.uniform(kw, (fan_in, fan_out), jnp.float32, -bound, bound)
        b = jax.random.uniform(kb, (1, fan_out), jnp.float32, -bound, bound)
        params += [w, b]
    return params


def reference_forward(x, w1, b1, w2, b2, w3, b3, compute_dtype=jnp.float32):
    """Pure-JAX reference. compute_dtype mirrors the kernel's MXU precision."""
    cd = compute_dtype
    h1 = jnp.maximum(
        jnp.dot(x.astype(cd), w1.astype(cd), preferred_element_type=jnp.float32)
        + b1.astype(jnp.float32), 0.0)
    h2 = jnp.maximum(
        jnp.dot(h1.astype(cd), w2.astype(cd), preferred_element_type=jnp.float32)
        + b2.astype(jnp.float32), 0.0)
    return (jnp.dot(h2.astype(cd), w3.astype(cd), preferred_element_type=jnp.float32)
            + b3.astype(jnp.float32))


if __name__ == "__main__":
    key = jax.random.PRNGKey(0)
    batch, input_dim = 8, 32

    kx, kp = jax.random.split(key)
    x = jax.random.normal(kx, (batch, input_dim), jnp.float32)
    params = init_params(kp, input_dim)

    out = content_based_model_forward(x, *params)
    out = jax.block_until_ready(out)
    assert out.shape == (batch, 1), out.shape

    ref_matched = reference_forward(x, *params, compute_dtype=jnp.bfloat16)
    ref_f32 = reference_forward(x, *params, compute_dtype=jnp.float32)
    assert jnp.allclose(out, ref_matched, atol=1e-3, rtol=1e-3), \
        "mismatch vs matched-precision reference"
    assert jnp.allclose(out, ref_f32, atol=5e-2, rtol=5e-2), \
        "mismatch vs f32 reference"

    # Second check: non-divisible batch + multi-step grid (exercises the no-pad
    # partial-last-block path and multiple lane-blocks of the shared output row).
    kx2 = jax.random.fold_in(kx, 1)
    x2 = jax.random.normal(kx2, (300, input_dim), jnp.float32)
    out2 = jax.block_until_ready(
        content_based_model_forward(x2, *params, block_b=128))
    ref2 = reference_forward(x2, *params, compute_dtype=jnp.bfloat16)
    assert out2.shape == (300, 1), out2.shape
    assert jnp.allclose(out2, ref2, atol=1e-3, rtol=1e-3), "mismatch (padded batch)"

    print("KERNEL_OK")
</pallas_src>

<mosaic_0001>
module attributes {stable_mosaic.version = 11 : i64} {
  func.func @_mlp_kernel(%arg0: i32, %arg1: memref<128x32xf32, #tpu.memory_space<vmem>>, %arg2: memref<32x128xbf16, #tpu.memory_space<vmem>>, %arg3: memref<1x128xf32, #tpu.memory_space<vmem>>, %arg4: memref<128x64xbf16, #tpu.memory_space<vmem>>, %arg5: memref<1x64xf32, #tpu.memory_space<vmem>>, %arg6: memref<1x64xbf16, #tpu.memory_space<vmem>>, %arg7: memref<1x1xf32, #tpu.memory_space<vmem>>, %arg8: memref<1x128xf32, #tpu.memory_space<vmem>>) attributes {dimension_semantics = [#tpu.dimension_semantics<parallel>], iteration_bounds = array<i64: 1>, scalar_prefetch = 0 : i64, scratch_operands = 0 : i64, tpu.core_type = #tpu.core_type<tc>, window_params = [{transform_indices = @transform_0, window_bounds = array<i64: 128, 32>}, {pipeline_mode = #tpu.pipeline_mode<synchronous>, transform_indices = @transform_1, window_bounds = array<i64: 32, 128>}, {pipeline_mode = #tpu.pipeline_mode<synchronous>, transform_indices = @transform_2, window_bounds = array<i64: 1, 128>}, {pipeline_mode = #tpu.pipeline_mode<synchronous>, transform_indices = @transform_3, window_bounds = array<i64: 128, 64>}, {pipeline_mode = #tpu.pipeline_mode<synchronous>, transform_indices = @transform_4, window_bounds = array<i64: 1, 64>}, {pipeline_mode = #tpu.pipeline_mode<synchronous>, transform_indices = @transform_5, window_bounds = array<i64: 1, 64>}, {pipeline_mode = #tpu.pipeline_mode<synchronous>, transform_indices = @transform_6, window_bounds = array<i64: 1, 1>}, {transform_indices = @transform_7, window_bounds = array<i64: 1, 128>}]} {
    %c0 = arith.constant 0 : index
    %c0_0 = arith.constant 0 : index
    %0 = vector.load %arg2[%c0, %c0_0] : memref<32x128xbf16, #tpu.memory_space<vmem>>, vector<32x128xbf16>
    %c0_1 = arith.constant 0 : index
    %c0_2 = arith.constant 0 : index
    %1 = vector.load %arg4[%c0_1, %c0_2] : memref<128x64xbf16, #tpu.memory_space<vmem>>, vector<128x64xbf16>
    %c0_3 = arith.constant 0 : index
    %c0_4 = arith.constant 0 : index
    %2 = vector.load %arg6[%c0_3, %c0_4] : memref<1x64xbf16, #tpu.memory_space<vmem>>, vector<1x64xbf16>
    %c0_5 = arith.constant 0 : index
    %c0_6 = arith.constant 0 : index
    %3 = vector.load %arg3[%c0_5, %c0_6] : memref<1x128xf32, #tpu.memory_space<vmem>>, vector<1x128xf32>
    %4 = vector.shape_cast %3 : vector<1x128xf32> to vector<1x128xf32>
    %5 = vector.broadcast %4 : vector<1x128xf32> to vector<128x128xf32>
    %c0_7 = arith.constant 0 : index
    %c0_8 = arith.constant 0 : index
    %6 = vector.load %arg5[%c0_7, %c0_8] : memref<1x64xf32, #tpu.memory_space<vmem>>, vector<1x64xf32>
    %7 = vector.shape_cast %6 : vector<1x64xf32> to vector<1x64xf32>
    %8 = vector.broadcast %7 : vector<1x64xf32> to vector<128x64xf32>
    %c0_9 = arith.constant 0 : index
    %c0_10 = arith.constant 0 : index
    %9 = vector.load %arg7[%c0_9, %c0_10] : memref<1x1xf32, #tpu.memory_space<vmem>>, vector<1x1xf32>
    %c0_11 = arith.constant 0 : index
    %c0_12 = arith.constant 0 : index
    %10 = vector.load %arg1[%c0_11, %c0_12] : memref<128x32xf32, #tpu.memory_space<vmem>>, vector<128x32xf32>
    %11 = arith.truncf %10 : vector<128x32xf32> to vector<128x32xbf16>
    %cst = arith.constant dense<0.000000e+00> : vector<128x128xf32>
    %12 = tpu.matmul %11, %0, %cst {dimension_numbers = #tpu.dot_dimension_numbers<[1], [0], [0], [1], [0, 0, 1, 1], [], []>} : vector<128x32xbf16>, vector<32x128xbf16>, vector<128x128xf32> -> vector<128x128xf32>
    %13 = arith.addf %12, %5 : vector<128x128xf32>
    %cst_13 = arith.constant 0.000000e+00 : f32
    %14 = vector.broadcast %cst_13 : f32 to vector<128x128xf32>
    %15 = arith.maximumf %13, %14 : vector<128x128xf32>
    %16 = arith.truncf %15 : vector<128x128xf32> to vector<128x128xbf16>
    %cst_14 = arith.constant dense<0.000000e+00> : vector<128x64xf32>
    %17 = tpu.matmul %16, %1, %cst_14 {dimension_numbers = #tpu.dot_dimension_numbers<[1], [0], [0], [1], [0, 0, 1, 1], [], []>} : vector<128x128xbf16>, vector<128x64xbf16>, vector<128x64xf32> -> vector<128x64xf32>
    %18 = arith.addf %17, %8 : vector<128x64xf32>
    %cst_15 = arith.constant 0.000000e+00 : f32
    %19 = vector.broadcast %cst_15 : f32 to vector<128x64xf32>
    %20 = arith.maximumf %18, %19 : vector<128x64xf32>
    %21 = arith.truncf %20 : vector<128x64xf32> to vector<128x64xbf16>
    %cst_16 = arith.constant dense<0.000000e+00> : vector<1x128xf32>
    %22 = tpu.matmul %2, %21, %cst_16 {dimension_numbers = #tpu.dot_dimension_numbers<[1], [1], [0], [0], [0, 0, 1, 0], [], []>} : vector<1x64xbf16>, vector<128x64xbf16>, vector<1x128xf32> -> vector<1x128xf32>
    %23 = vector.broadcast %9 : vector<1x1xf32> to vector<1x128xf32>
    %24 = arith.addf %22, %23 : vector<1x128xf32>
    %c0_17 = arith.constant 0 : index
    %c0_18 = arith.constant 0 : index
    %25 = vector.load %arg8[%c0_17, %c0_18] : memref<1x128xf32, #tpu.memory_space<vmem>>, vector<1x128xf32>
    tpu.vector_store %arg8[%c0_17, %c0_18], %24 {strides = array<i32>} : memref<1x128xf32, #tpu.memory_space<vmem>>, vector<1x128xf32>,
    return
  }
  func.func @transform_0(%arg0: i32) -> (i32, i32) {
    %c0_i32 = arith.constant 0 : i32
    %c0_i32_0 = arith.constant 0 : i32
    return %arg0, %c0_i32 : i32, i32
  }
  func.func @transform_1(%arg0: i32) -> (i32, i32) {
    %c0_i32 = arith.constant 0 : i32
    %c0_i32_0 = arith.constant 0 : i32
    %c0_i32_1 = arith.constant 0 : i32
    return %c0_i32, %c0_i32_0 : i32, i32
  }
  func.func @transform_2(%arg0: i32) -> (i32, i32) {
    %c0_i32 = arith.constant 0 : i32
    %c0_i32_0 = arith.constant 0 : i32
    %c0_i32_1 = arith.constant 0 : i32
    return %c0_i32, %c0_i32_0 : i32, i32
  }
  func.func @transform_3(%arg0: i32) -> (i32, i32) {
    %c0_i32 = arith.constant 0 : i32
    %c0_i32_0 = arith.constant 0 : i32
    %c0_i32_1 = arith.constant 0 : i32
    return %c0_i32, %c0_i32_0 : i32, i32
  }
  func.func @transform_4(%arg0: i32) -> (i32, i32) {
    %c0_i32 = arith.constant 0 : i32
    %c0_i32_0 = arith.constant 0 : i32
    %c0_i32_1 = arith.constant 0 : i32
    return %c0_i32, %c0_i32_0 : i32, i32
  }
  func.func @transform_5(%arg0: i32) -> (i32, i32) {
    %c0_i32 = arith.constant 0 : i32
    %c0_i32_0 = arith.constant 0 : i32
    %c0_i32_1 = arith.constant 0 : i32
    return %c0_i32, %c0_i32_0 : i32, i32
  }
  func.func @transform_6(%arg0: i32) -> (i32, i32) {
    %c0_i32 = arith.constant 0 : i32
    %c0_i32_0 = arith.constant 0 : i32
    %c0_i32_1 = arith.constant 0 : i32
    return %c0_i32, %c0_i32_0 : i32, i32
  }
  func.func @transform_7(%arg0: i32) -> (i32, i32) {
    %c0_i32 = arith.constant 0 : i32
    %c0_i32_0 = arith.constant 0 : i32
    return %c0_i32, %arg0 : i32, i32
  }
}

</mosaic_0001>

<bundles_post_ra>
// kernel: content_based_model_forward.1
= control target key start
LH: loop header
LB: loop body
LE: loop exit
PB: predicated region body
PF: predicated region fallthrough
CT: control target
= control target key end

     0   :  { %vm95_vm0 = vcmask 261120   ;;  %vm320_vm1 = vcmask 523264   ;;  %s594_s1 = inlined_call_operand.vmem [shape: bf16[32,128], index: 1, kind: input, shape index: {}]   ;;  %s595_s0 = inlined_call_operand.vmem [shape: f32[8,32], index: 0, kind: input, shape index: {}]   ;;  %s596_s2 = inlined_call_operand.vmem [shape: f32[1,128], index: 2, kind: input, shape index: {}]   ;;  %s597_s3 = inlined_call_operand.vmem [shape: bf16[128,64], index: 3, kind: input, shape index: {}]   ;;  %s598_s4 = inlined_call_operand.vmem [shape: f32[1,64], index: 4, kind: input, shape index: {}]   ;;  %s599_s6 = inlined_call_operand.<no memory space> [shape: f32[1,1], index: 6, kind: input, shape index: {}]   ;;  %s600_s5 = inlined_call_operand.vmem [shape: bf16[1,64], index: 5, kind: input, shape index: {}]   ;;  %s601_s7 = inlined_call_operand.vmem [shape: f32[1,128], index: 7, kind: output, shape index: {}]  }
   0x1   :  { %v416_v0 = vld [vmem:[%s594_s1 + $0x8] sm:$0xff]  ;;  %v415_v1 = vld [vmem:[%s594_s1] sm:$0xff]  ;;  %v61_v5 = vld [vmem:[%s595_s0 + $0x10] sm:$0xff] }
   0x2   :  { %126 = vmatpush.bf16.msra.mxu0 %v416_v0  ;;  %v59_v2 = vld [vmem:[%s595_s0] sm:$0xff]  ;;  %v60_v3 = vld [vmem:[%s595_s0 + $0x8] sm:$0xff]  ;;  %v62_v6 = vld [vmem:[%s595_s0 + $0x18] sm:$0xff] }
   0x3   :  { %v75_v4 = vpack.c.bf16 %v60_v3, %v59_v2  ;;  %v76_v7 = vpack.c.bf16 %v62_v6, %v61_v5  ;;  %v63_v8 = vld [vmem:[%s595_s0 + $0x20] sm:$0xff]  ;;  %v64_v9 = vld [vmem:[%s595_s0 + $0x28] sm:$0xff]  ;;  %v65_v11 = vld [vmem:[%s595_s0 + $0x30] sm:$0xff] }
   0x4   :  { %v77_v10 = vpack.c.bf16 %v64_v9, %v63_v8  ;;  %v66_v12 = vld [vmem:[%s595_s0 + $0x38] sm:$0xff]  ;;  %v67_v14 = vld [vmem:[%s595_s0 + $0x40] sm:$0xff]  ;;  %v68_v15 = vld [vmem:[%s595_s0 + $0x48] sm:$0xff] }
   0x5   :  { %v78_v13 = vpack.c.bf16 %v66_v12, %v65_v11  ;;  %v79_v16 = vpack.c.bf16 %v68_v15, %v67_v14  ;;  %v424_v17 = vld [vmem:[%s597_s3 + $0x38] sm:$0xff]  ;;  %v69_v18 = vld [vmem:[%s595_s0 + $0x50] sm:$0xff]  ;;  %v422_v22 = vld [vmem:[%s597_s3 + $0x28] sm:$0xff] }
   0x6   :  { %127 = vmatpush.bf16.msra.mxu0 %v415_v1  ;;  %241 = vmatpush.bf16.msra.mxu1 %v424_v17  ;;  %v70_v19 = vld [vmem:[%s595_s0 + $0x58] sm:$0xff]  ;;  %v423_v21 = vld [vmem:[%s597_s3 + $0x30] sm:$0xff]  ;;  %v421_v23 = vld [vmem:[%s597_s3 + $0x20] sm:$0xff] }
   0x7   :  { %425 = vmatpush.bf16.msra.mxu3 %v424_v17  ;;  %v80_v20 = vpack.c.bf16 %v70_v19, %v69_v18  ;;  %v71_v24 = vld [vmem:[%s595_s0 + $0x60] sm:$0xff]  ;;  %v72_v25 = vld [vmem:[%s595_s0 + $0x68] sm:$0xff]  ;;  %v420_v26 = vld [vmem:[%s597_s3 + $0x18] sm:$0xff] }
   0x8   :  { %v81_v27 = vpack.c.bf16 %v72_v25, %v71_v24  ;;  %v419_v28 = vld [vmem:[%s597_s3 + $0x10] sm:$0xff]  ;;  %v418_v29 = vld [vmem:[%s597_s3 + $0x8] sm:$0xff]  ;;  %v417_v30 = vld [vmem:[%s597_s3] sm:$0xff] }
   0x9   :  { %374 = vmatmul.msk.bf16.vlgmr.msra.gmra.mxu0 %vm95_vm0, %v75_v4  ;;  %v73_v31 = vld [vmem:[%s595_s0 + $0x70] sm:$0xff]  ;;  %v74_v32 = vld [vmem:[%s595_s0 + $0x78] sm:$0xff]  ;;  %v435_v35 = vld [vmem:[%s596_s2] ss:$0 sm:$0xff] }
   0xa   :  { %242 = vmatpush.bf16.msra.mxu1 %v423_v21  ;;  %v82_v33 = vpack.c.bf16 %v74_v32, %v73_v31 }
   0xb   :  { %426 = vmatpush.bf16.msra.mxu3 %v423_v21 }
   0xe   :  { %243 = vmatpush.bf16.msra.mxu1 %v422_v22 }
   0xf   :  { %427 = vmatpush.bf16.msra.mxu3 %v422_v22 }
  0x12   :  { %244 = vmatpush.bf16.msra.mxu1 %v421_v23 }
  0x13   :  { %428 = vmatpush.bf16.msra.mxu3 %v421_v23 }
  0x16   :  { %245 = vmatpush.bf16.msra.mxu1 %v420_v26 }
  0x17   :  { %429 = vmatpush.bf16.msra.mxu3 %v420_v26 }
  0x19   :  { %375 = vmatmul.msk.bf16.gmra.mxu0 %vm95_vm0, %v76_v7 }
  0x1a   :  { %246 = vmatpush.bf16.msra.mxu1 %v419_v28 }
  0x1b   :  { %430 = vmatpush.bf16.msra.mxu3 %v419_v28  ;;  %v436_v28 = vld [vmem:[%s598_s4] ss:$0 sm:$0xff] }
  0x1e   :  { %247 = vmatpush.bf16.msra.mxu1 %v418_v29 }
  0x1f   :  { %431 = vmatpush.bf16.msra.mxu3 %v418_v29 }
  0x22   :  { %248 = vmatpush.bf16.msra.mxu1 %v417_v30 }
  0x23   :  { %432 = vmatpush.bf16.msra.mxu3 %v417_v30 }
  0x29   :  { %376 = vmatmul.msk.bf16.gmra.mxu0 %vm95_vm0, %v77_v10 }
  0x39   :  { %377 = vmatmul.msk.bf16.gmra.mxu0 %vm95_vm0, %v78_v13 }
  0x49   :  { %378 = vmatmul.msk.bf16.gmra.mxu0 %vm95_vm0, %v79_v16 }
  0x59   :  { %379 = vmatmul.msk.bf16.gmra.mxu0 %vm95_vm0, %v80_v20 }
  0x69   :  { %380 = vmatmul.msk.bf16.gmra.mxu0 %vm95_vm0, %v81_v27 }
  0x79   :  { %381 = vmatmul.msk.bf16.gmra.mxu0 %vm95_vm0, %v82_v33 }
  0x86   :  { %v129_v34 = vpop.f32.mrf.mxu0 }
  0x87   :  { %v130_v36 = vadd.f32 %v435_v35, %v129_v34 }
  0x89   :  { %v169_v39 = vmax.f32 %v130_v36, 0.0 }
  0x8e   :  { %v131_v37 = vpop.f32.mrf.mxu0 }
  0x8f   :  { %v132_v38 = vadd.f32 %v435_v35, %v131_v37 }
  0x91   :  { %v170_v40 = vmax.f32 %v132_v38, 0.0 }
  0x93   :  { %v185_v41 = vpack.c.bf16 %v170_v40, %v169_v39 }
  0x95   :  { %249 = vmatmul.bf16.vlgmr.msra.gmra.mxu1 %v185_v41 }
  0x96   :  { %v134_v42 = vpop.f32.mrf.mxu0 }
  0x97   :  { %v135_v43 = vadd.f32 %v435_v35, %v134_v42 }
  0x99   :  { %v171_v46 = vmax.f32 %v135_v43, 0.0 }
  0x9e   :  { %v136_v44 = vpop.f32.mrf.mxu0 }
  0x9f   :  { %v137_v45 = vadd.f32 %v435_v35, %v136_v44 }
  0xa1   :  { %v172_v47 = vmax.f32 %v137_v45, 0.0 }
  0xa3   :  { %v186_v48 = vpack.c.bf16 %v172_v47, %v171_v46 }
  0xa5   :  { %254 = vmatmul.bf16.gmra.mxu1 %v186_v48 }
  0xa6   :  { %v139_v49 = vpop.f32.mrf.mxu0 }
  0xa7   :  { %v140_v50 = vadd.f32 %v435_v35, %v139_v49 }
  0xa9   :  { %v173_v53 = vmax.f32 %v140_v50, 0.0 }
  0xae   :  { %v141_v51 = vpop.f32.mrf.mxu0 }
  0xaf   :  { %v142_v52 = vadd.f32 %v435_v35, %v141_v51 }
  0xb1   :  { %v174_v54 = vmax.f32 %v142_v52, 0.0 }
  0xb3   :  { %v187_v55 = vpack.c.bf16 %v174_v54, %v173_v53 }
  0xb5   :  { %259 = vmatmul.bf16.gmra.mxu1 %v187_v55 }
  0xb6   :  { %v144_v56 = vpop.f32.mrf.mxu0 }
  0xb7   :  { %v145_v57 = vadd.f32 %v435_v35, %v144_v56 }
  0xb9   :  { %v175_v60 = vmax.f32 %v145_v57, 0.0 }
  0xbe   :  { %v146_v58 = vpop.f32.mrf.mxu0 }
  0xbf   :  { %v147_v59 = vadd.f32 %v435_v35, %v146_v58 }
  0xc1   :  { %v176_v61 = vmax.f32 %v147_v59, 0.0 }
  0xc3   :  { %v188_v62 = vpack.c.bf16 %v176_v61, %v175_v60 }
  0xc5   :  { %264 = vmatmul.bf16.gmra.mxu1 %v188_v62 }
  0xc6   :  { %v149_v63 = vpop.f32.mrf.mxu0 }
  0xc7   :  { %v150_v0 = vadd.f32 %v435_v35, %v149_v63 }
  0xc9   :  { %v177_v3 = vmax.f32 %v150_v0, 0.0 }
  0xce   :  { %v151_v1 = vpop.f32.mrf.mxu0 }
  0xcf   :  { %v152_v2 = vadd.f32 %v435_v35, %v151_v1 }
  0xd1   :  { %v178_v4 = vmax.f32 %v152_v2, 0.0 }
  0xd3   :  { %v189_v5 = vpack.c.bf16 %v178_v4, %v177_v3 }
  0xd5   :  { %269 = vmatmul.bf16.gmra.mxu1 %v189_v5 }
  0xd6   :  { %v154_v6 = vpop.f32.mrf.mxu0 }
  0xd7   :  { %v155_v7 = vadd.f32 %v435_v35, %v154_v6 }
  0xd9   :  { %v179_v10 = vmax.f32 %v155_v7, 0.0 }
  0xde   :  { %v156_v8 = vpop.f32.mrf.mxu0 }
  0xdf   :  { %v157_v9 = vadd.f32 %v435_v35, %v156_v8 }
  0xe1   :  { %v180_v11 = vmax.f32 %v157_v9, 0.0 }
  0xe3   :  { %v190_v12 = vpack.c.bf16 %v180_v11, %v179_v10 }
  0xe5   :  { %274 = vmatmul.bf16.vlgmr.msra.gmra.mxu3 %v190_v12 }
  0xe6   :  { %v159_v13 = vpop.f32.mrf.mxu0 }
  0xe7   :  { %v160_v14 = vadd.f32 %v435_v35, %v159_v13 }
  0xe9   :  { %v181_v17 = vmax.f32 %v160_v14, 0.0 }
  0xee   :  { %v161_v15 = vpop.f32.mrf.mxu0 }
  0xef   :  { %v162_v16 = vadd.f32 %v435_v35, %v161_v15 }
  0xf1   :  { %v182_v18 = vmax.f32 %v162_v16, 0.0 }
  0xf3   :  { %v191_v19 = vpack.c.bf16 %v182_v18, %v181_v17 }
  0xf5   :  { %279 = vmatmul.bf16.gmra.mxu3 %v191_v19 }
  0xf6   :  { %v164_v20 = vpop.f32.mrf.mxu0 }
  0xf7   :  { %v165_v21 = vadd.f32 %v435_v35, %v164_v20 }
  0xf9   :  { %v183_v24 = vmax.f32 %v165_v21, 0.0 }
  0xfe   :  { %v166_v22 = vpop.f32.mrf.mxu0 }
  0xff   :  { %v167_v23 = vadd.f32 %v435_v35, %v166_v22 }
 0x101   :  { %v184_v25 = vmax.f32 %v167_v23, 0.0  ;;  %v12_v23 = vstv %s599_s6 }
 0x102   :  { %13 = vst [vmem:[#allocation2] sm:$0x1] %v12_v23 }
 0x103   :  { %v192_v26 = vpack.c.bf16 %v184_v25, %v183_v24  ;;  %v437_v24 = vmov 0  }
 0x104   :  { %434 = vset.pattern.permute.xlu0 %v437_v24 }
 0x105   :  { %284 = vmatmul.bf16.gmra.mxu3 %v192_v26 }
 0x112   :  { %v250_v27 = vpop.f32.mrf.mxu1 }
 0x113   :  { %v251_v29 = vadd.f32 %v436_v28, %v250_v27 }
 0x115   :  { %v290_v32 = vmax.f32 %v251_v29, 0.0  ;;  %v58_v29 = vld [vmem:[#allocation2] sm:$0x1] }
 0x116   :  { %316 = vperm.xlu0 %434, %v58_v29  }
 0x11a   :  { %v252_v30 = vpop.f32.mrf.mxu1 }
 0x11b   :  { %v253_v31 = vadd.f32 %v436_v28, %v252_v30 }
 0x11d   :  { %v291_v33 = vmax.f32 %v253_v31, 0.0  ;;  %v49_v31 = vld [vmem:[%s600_s5] sm:$0x1] }
 0x11f   :  { %v570_v34 = vpack.c.bf16 %v291_v33, %v290_v32 }
 0x121   :  { %v325_v30 = vsel %vm320_vm1, %v570_v34, 0 }
 0x122   :  { %v255_v36 = vpop.f32.mrf.mxu1 }
 0x123   :  { %v256_v37 = vadd.f32 %v436_v28, %v255_v36 }
 0x125   :  { %v292_v39 = vmax.f32 %v256_v37, 0.0 }
 0x12a   :  { %v257_v38 = vpop.f32.mrf.mxu1 }
 0x12b   :  { %v258_v35 = vadd.f32 %v436_v28, %v257_v38 }
 0x12d   :  { %v293_v40 = vmax.f32 %v258_v35, 0.0 }
 0x12f   :  { %v572_v41 = vpack.c.bf16 %v293_v40, %v292_v39 }
 0x132   :  { %v260_v43 = vpop.f32.mrf.mxu1 }
 0x133   :  { %v261_v20 = vadd.f32 %v436_v28, %v260_v43 }
 0x135   :  { %v294_v25 = vmax.f32 %v261_v20, 0.0 }
 0x13a   :  { %v262_v45 = vpop.f32.mrf.mxu1 }
 0x13b   :  { %v263_v18 = vadd.f32 %v436_v28, %v262_v45 }
 0x13d   :  { %v295_v21 = vmax.f32 %v263_v18, 0.0 }
 0x13f   :  { %v308_v26 = vpack.c.bf16 %v295_v21, %v294_v25 }
 0x141   :  { %v331_v27 = vsel %vm320_vm1, %v308_v26, 0 }
 0x142   :  { %v265_v48 = vpop.f32.mrf.mxu1 }
 0x143   :  { %v266_v14 = vadd.f32 %v436_v28, %v265_v48 }
 0x145   :  { %v296_v17 = vmax.f32 %v266_v14, 0.0 }
 0x14a   :  { %v267_v50 = vpop.f32.mrf.mxu1 }
 0x14b   :  { %v268_v12 = vadd.f32 %v436_v28, %v267_v50 }
 0x14d   :  { %v297_v15 = vmax.f32 %v268_v12, 0.0 }
 0x14f   :  { %v309_v19 = vpack.c.bf16 %v297_v15, %v296_v17 }
 0x151   :  { %v334_v22 = vsel %vm320_vm1, %v309_v19, 0 }
 0x152   :  { %v270_v59 = vpop.f32.mrf.mxu1 }
 0x153   :  { %v271_v8 = vadd.f32 %v436_v28, %v270_v59 }
 0x155   :  { %v298_v11 = vmax.f32 %v271_v8, 0.0 }
 0x15a   :  { %v272_v4 = vpop.f32.mrf.mxu1 }
 0x15b   :  { %v273_v6 = vadd.f32 %v436_v28, %v272_v4 }
 0x15d   :  { %v299_v9 = vmax.f32 %v273_v6, 0.0 }
 0x15f   :  { %v310_v13 = vpack.c.bf16 %v299_v9, %v298_v11 }
 0x161   :  { %v337_v16 = vsel %vm320_vm1, %v310_v13, 0 }
 0x168   :  { %v275_v42 = vpop.f32.mrf.mxu3 }
 0x169   :  { %v276_v1 = vadd.f32 %v436_v28, %v275_v42 }
 0x16b   :  { %v300_v5 = vmax.f32 %v276_v1, 0.0 }
 0x170   :  { %v277_v44 = vpop.f32.mrf.mxu3 }
 0x171   :  { %v278_v63 = vadd.f32 %v436_v28, %v277_v44 }
 0x173   :  { %v301_v2 = vmax.f32 %v278_v63, 0.0 }
 0x175   :  { %v311_v7 = vpack.c.bf16 %v301_v2, %v300_v5 }
 0x177   :  { %v340_v10 = vsel %vm320_vm1, %v311_v7, 0 }
 0x178   :  { %v280_v46 = vpop.f32.mrf.mxu3 }
 0x179   :  { %v281_v57 = vadd.f32 %v436_v28, %v280_v46 }
 0x17b   :  { %v302_v62 = vmax.f32 %v281_v57, 0.0 }
 0x180   :  { %v282_v47 = vpop.f32.mrf.mxu3 }
 0x181   :  { %v283_v54 = vadd.f32 %v436_v28, %v282_v47 }
 0x183   :  { %v303_v60 = vmax.f32 %v283_v54, 0.0 }
 0x185   :  { %v312_v0 = vpack.c.bf16 %v303_v60, %v302_v62 }
 0x187   :  { %v343_v3 = vsel %vm320_vm1, %v312_v0, 0 }
 0x188   :  { %v285_v49 = vpop.f32.mrf.mxu3  ;;  %v317_v32 = vpop.permute.xlu0 %316 }
 0x189   :  { %v286_v51 = vadd.f32 %v436_v28, %v285_v49  ;;  %v319_v33 = vperm.slane %v317_v32, 0 }
 0x18b   :  { %v304_v55 = vmax.f32 %v286_v51, 0.0 }
 0x190   :  { %v287_v52 = vpop.f32.mrf.mxu3 }
 0x191   :  { %v288_v53 = vadd.f32 %v436_v28, %v287_v52  ;;  %v328_v28 = vsel %vm320_vm1, %v572_v41, 0 }
 0x193   :  { %v305_v56 = vmax.f32 %v288_v53, 0.0 }
 0x195   :  { %v313_v58 = vpack.c.bf16 %v305_v56, %v304_v55 }
 0x197   :  { %v346_v61 = vsel %vm320_vm1, %v313_v58, 0 }
 0x198   :  { %348 = vmatpush.bf16.xpose.msra.mxu2 %v346_v61 }
 0x1a0   :  { %349 = vmatpush.bf16.xpose.msra.mxu2 %v343_v3 }
 0x1a8   :  { %350 = vmatpush.bf16.xpose.msra.mxu2 %v340_v10 }
 0x1b0   :  { %351 = vmatpush.bf16.xpose.msra.mxu2 %v337_v16 }
 0x1b8   :  { %352 = vmatpush.bf16.xpose.msra.mxu2 %v334_v22 }
 0x1c0   :  { %353 = vmatpush.bf16.xpose.msra.mxu2 %v331_v27 }
 0x1c8   :  { %354 = vmatpush.bf16.xpose.msra.mxu2 %v328_v28 }
 0x1d0   :  { %355 = vmatpush.bf16.xpose.msra.mxu2 %v325_v30 }
 0x1d7   :  { %414 = vmatmul.msk.bf16.vlgmr.msra.gmra.mxu2 %vm320_vm1, %v49_v31 }
 0x25a   :  { %v357_v36 = vpop.f32.mrf.mxu2 }
 0x25b   :  { %v358_v37 = vadd.f32 %v357_v36, %v319_v33 }
 0x25d   :  { %361 = vst [vmem:[%s601_s7] sm:$0x1] %v358_v37 }
 0x262   :  { %v359_v38 = vpop.f32.mrf.mxu2 }

</bundles_post_ra>
